<compile_context>
chip_gen: v6e
topology: v6e:2x2x1
jax: 0.10.0
libtpu: 0.0.40
codegen_flags: <defaults>
</compile_context>

<pallas_src>
import jax
import jax.numpy as jnp
from jax.experimental import pallas as pl
from jax.experimental.pallas import tpu as pltpu

HIDDEN = 190   # fixed by the PyTorch module definition
LANE = 128     # TPU vreg lane width
SUBLANE = 8    # f32 sublane packing


def _round_up(x, m):
    return (x + m - 1) // m * m


def _cdiv(a, b):
    return -(-a // b)


def _mlp_kernel(x_ref, w1_ref, b1_ref, w2_ref, b2_ref, o_ref):
    # Cast the f32 activations to the weight dtype (bf16) in-kernel; the cast
    # is VPU work hidden under the DMA/MXU and avoids a separate HBM pass.
    x = x_ref[...].astype(w1_ref.dtype)
    # fc1: (TB, In) @ (In, Hp) -> f32 accumulation on the MXU.
    h = jnp.dot(x, w1_ref[...], preferred_element_type=jnp.float32)
    # Bias add + ReLU in f32 (v5e VPU has no bf16 path).
    h = jnp.maximum(h + b1_ref[...], 0.0)
    # fc2: (TB, Hp) @ (Hp, Out) with f32 accumulation; store true-width f32.
    out = jnp.dot(h.astype(w2_ref.dtype), w2_ref[...],
                  preferred_element_type=jnp.float32)
    o_ref[...] = (out + b2_ref[...]).astype(o_ref.dtype)


def prepare_params(w1, b1, w2, b2, *, param_dtype=jnp.bfloat16):
    """One-time padding / casting of the parameters (call once, reuse per step).

    - hidden (190) is zero-padded to 256 so both matmuls see MXU-aligned tiles
      (zero columns/rows are inert through bias-add -> ReLU -> fc2).
    - output keeps its TRUE width (stores are masked but tiny; far fewer HBM
      bytes than a 128-padded f32 writeback, and no post-kernel slice).
    - weights cast to bf16 (half the HBM bytes, full-rate MXU); biases stay f32.
    """
    in_size, hidden = w1.shape
    out_size = w2.shape[1]
    h_pad = _round_up(hidden, LANE)  # 190 -> 256

    w1p = jnp.zeros((in_size, h_pad), jnp.float32).at[:, :hidden].set(w1)
    b1p = jnp.zeros((1, h_pad), jnp.float32).at[:, :hidden].set(b1.reshape(1, -1))
    w2p = jnp.zeros((h_pad, out_size), jnp.float32).at[:hidden, :].set(w2)
    b2p = b2.reshape(1, -1).astype(jnp.float32)

    return dict(
        w1=w1p.astype(param_dtype),
        b1=b1p,                     # f32 bias
        w2=w2p.astype(param_dtype),
        b2=b2p,                     # f32 bias
        out_size=out_size,
    )


def shallow_model_forward(x, params, *, block_b=1024):
    """x: (B, In) float32; params from prepare_params(). Returns (B, out_size) f32."""
    batch, in_size = x.shape
    w1, b1, w2, b2 = params["w1"], params["b1"], params["w2"], params["b2"]
    out_size = params["out_size"]
    h_pad = w1.shape[1]

    # ---- batch tiling: avoid pathological padding, keep both TCs busy -------
    batch8 = _round_up(batch, SUBLANE)          # only pad to the sublane size
    tb = min(block_b, batch8)
    num_tiles = _cdiv(batch8, tb)
    if num_tiles == 1 and batch8 >= 256:
        num_tiles = 2                           # v7x megacore: >=2 grid steps
    # Re-balance so the trailing tile isn't mostly zero padding.
    tb = _round_up(_cdiv(batch8, num_tiles), SUBLANE)
    batch_pad = num_tiles * tb

    xin = x
    if batch_pad != batch:
        xin = jnp.pad(x, ((0, batch_pad - batch), (0, 0)))

    grid = (num_tiles,)

    # ---- cost / VMEM accounting ---------------------------------------------
    flops = 2 * batch_pad * (in_size * h_pad + h_pad * out_size)
    bytes_accessed = (
        batch_pad * in_size * 4
        + w1.size * w1.dtype.itemsize + b1.size * 4
        + w2.size * w2.dtype.itemsize + b2.size * 4
        + batch_pad * out_size * 4
    )
    vmem_need = (
        2 * tb * in_size * 4          # double-buffered f32 x tiles
        + 2 * tb * out_size * 4       # double-buffered f32 out tiles
        + tb * h_pad * 4              # in-kernel activation
        + w1.size * w1.dtype.itemsize + b1.size * 4   # single-buffered params
        + w2.size * w2.dtype.itemsize + b2.size * 4
    )
    vmem_limit = int(min(96 << 20, max(32 << 20, 2 * vmem_need)))

    resident = dict(pipeline_mode=pl.Buffered(1))   # params: constant index_map

    out = pl.pallas_call(
        _mlp_kernel,
        out_shape=jax.ShapeDtypeStruct((batch_pad, out_size), jnp.float32),
        grid_spec=pl.GridSpec(
            grid=grid,
            in_specs=[
                pl.BlockSpec((tb, in_size), lambda i: (i, 0)),            # x tile
                pl.BlockSpec((in_size, h_pad), lambda i: (0, 0), **resident),
                pl.BlockSpec((1, h_pad), lambda i: (0, 0), **resident),
                pl.BlockSpec((h_pad, out_size), lambda i: (0, 0), **resident),
                pl.BlockSpec((1, out_size), lambda i: (0, 0), **resident),
            ],
            out_specs=pl.BlockSpec((tb, out_size), lambda i: (i, 0)),
        ),
        compiler_params=pltpu.CompilerParams(
            dimension_semantics=("parallel",),       # batch axis is independent
            vmem_limit_bytes=vmem_limit,
        ),
        cost_estimate=pl.CostEstimate(
            flops=flops, transcendentals=0, bytes_accessed=bytes_accessed),
    )(xin, w1, b1, w2, b2)

    # Only a batch slice remains (output feature dim is already true-width).
    if batch_pad != batch:
        out = out[:batch]
    return out


def init_params(key, input_size, output_size):
    """Deterministic init mimicking nn.Linear's U(-1/sqrt(fan_in), 1/sqrt(fan_in))."""
    k1, k2, k3, k4 = jax.random.split(key, 4)
    bound1 = 1.0 / jnp.sqrt(jnp.float32(input_size))
    bound2 = 1.0 / jnp.sqrt(jnp.float32(HIDDEN))
    w1 = jax.random.uniform(k1, (input_size, HIDDEN), jnp.float32, -bound1, bound1)
    b1 = jax.random.uniform(k2, (HIDDEN,), jnp.float32, -bound1, bound1)
    w2 = jax.random.uniform(k3, (HIDDEN, output_size), jnp.float32, -bound2, bound2)
    b2 = jax.random.uniform(k4, (output_size,), jnp.float32, -bound2, bound2)
    return w1, b1, w2, b2


if __name__ == "__main__":
    batch = 2
    input_size = 32
    output_size = 16

    key = jax.random.PRNGKey(0)
    kx, kp = jax.random.split(key)
    x = jax.random.normal(kx, (batch, input_size), dtype=jnp.float32)
    w1, b1, w2, b2 = init_params(kp, input_size, output_size)

    params = prepare_params(w1, b1, w2, b2, param_dtype=jnp.bfloat16)
    out = shallow_model_forward(x, params)
    jax.block_until_ready(out)
    assert out.shape == (batch, output_size)

    # Reference built from the same bf16-rounded operands the kernel sees.
    xr = x.astype(jnp.bfloat16).astype(jnp.float32)
    w1r = w1.astype(jnp.bfloat16).astype(jnp.float32)
    w2r = w2.astype(jnp.bfloat16).astype(jnp.float32)
    h_ref = jnp.maximum(xr @ w1r + b1.reshape(1, -1), 0.0)
    ref = h_ref.astype(jnp.bfloat16).astype(jnp.float32) @ w2r + b2.reshape(1, -1)
    assert jnp.allclose(out, ref, atol=1e-2, rtol=1e-2), (
        float(jnp.max(jnp.abs(out - ref))))

    # Loose sanity check against the full f32 forward (bf16 rounding tolerance).
    ref_f32 = jnp.maximum(x @ w1 + b1.reshape(1, -1), 0.0) @ w2 + b2.reshape(1, -1)
    assert jnp.allclose(out, ref_f32, atol=1e-1, rtol=1e-1)

    print("KERNEL_OK")
</pallas_src>

<mosaic_0001>
module attributes {stable_mosaic.version = 11 : i64} {
  func.func @_mlp_kernel(%arg0: i32, %arg1: memref<8x32xf32, #tpu.memory_space<vmem>>, %arg2: memref<32x256xbf16, #tpu.memory_space<vmem>>, %arg3: memref<1x256xf32, #tpu.memory_space<vmem>>, %arg4: memref<256x16xbf16, #tpu.memory_space<vmem>>, %arg5: memref<1x16xf32, #tpu.memory_space<vmem>>, %arg6: memref<8x16xf32, #tpu.memory_space<vmem>>) attributes {dimension_semantics = [#tpu.dimension_semantics<parallel>], iteration_bounds = array<i64: 1>, scalar_prefetch = 0 : i64, scratch_operands = 0 : i64, tpu.core_type = #tpu.core_type<tc>, window_params = [{transform_indices = @transform_0, window_bounds = array<i64: 8, 32>}, {pipeline_mode = #tpu.pipeline_mode<synchronous>, transform_indices = @transform_1, window_bounds = array<i64: 32, 256>}, {pipeline_mode = #tpu.pipeline_mode<synchronous>, transform_indices = @transform_2, window_bounds = array<i64: 1, 256>}, {pipeline_mode = #tpu.pipeline_mode<synchronous>, transform_indices = @transform_3, window_bounds = array<i64: 256, 16>}, {pipeline_mode = #tpu.pipeline_mode<synchronous>, transform_indices = @transform_4, window_bounds = array<i64: 1, 16>}, {transform_indices = @transform_5, window_bounds = array<i64: 8, 16>}]} {
    %c0 = arith.constant 0 : index
    %c0_0 = arith.constant 0 : index
    %0 = vector.load %arg1[%c0, %c0_0] : memref<8x32xf32, #tpu.memory_space<vmem>>, vector<8x32xf32>
    %1 = arith.truncf %0 : vector<8x32xf32> to vector<8x32xbf16>
    %c0_1 = arith.constant 0 : index
    %c0_2 = arith.constant 0 : index
    %2 = vector.load %arg2[%c0_1, %c0_2] : memref<32x256xbf16, #tpu.memory_space<vmem>>, vector<32x256xbf16>
    %cst = arith.constant dense<0.000000e+00> : vector<8x256xf32>
    %3 = tpu.matmul %1, %2, %cst {dimension_numbers = #tpu.dot_dimension_numbers<[1], [0], [0], [1], [0, 0, 1, 1], [], []>} : vector<8x32xbf16>, vector<32x256xbf16>, vector<8x256xf32> -> vector<8x256xf32>
    %c0_3 = arith.constant 0 : index
    %c0_4 = arith.constant 0 : index
    %4 = vector.load %arg3[%c0_3, %c0_4] : memref<1x256xf32, #tpu.memory_space<vmem>>, vector<1x256xf32>
    %5 = vector.broadcast %4 : vector<1x256xf32> to vector<8x256xf32>
    %6 = arith.addf %3, %5 : vector<8x256xf32>
    %cst_5 = arith.constant 0.000000e+00 : f32
    %7 = vector.broadcast %cst_5 : f32 to vector<8x256xf32>
    %8 = arith.maximumf %6, %7 : vector<8x256xf32>
    %9 = arith.truncf %8 : vector<8x256xf32> to vector<8x256xbf16>
    %c0_6 = arith.constant 0 : index
    %c0_7 = arith.constant 0 : index
    %10 = vector.load %arg4[%c0_6, %c0_7] : memref<256x16xbf16, #tpu.memory_space<vmem>>, vector<256x16xbf16>
    %cst_8 = arith.constant dense<0.000000e+00> : vector<8x16xf32>
    %11 = tpu.matmul %9, %10, %cst_8 {dimension_numbers = #tpu.dot_dimension_numbers<[1], [0], [0], [1], [0, 0, 1, 1], [], []>} : vector<8x256xbf16>, vector<256x16xbf16>, vector<8x16xf32> -> vector<8x16xf32>
    %c0_9 = arith.constant 0 : index
    %c0_10 = arith.constant 0 : index
    %12 = vector.load %arg5[%c0_9, %c0_10] : memref<1x16xf32, #tpu.memory_space<vmem>>, vector<1x16xf32>
    %13 = vector.broadcast %12 : vector<1x16xf32> to vector<8x16xf32>
    %14 = arith.addf %11, %13 : vector<8x16xf32>
    %c0_11 = arith.constant 0 : index
    %c0_12 = arith.constant 0 : index
    %15 = vector.load %arg6[%c0_11, %c0_12] : memref<8x16xf32, #tpu.memory_space<vmem>>, vector<8x16xf32>
    tpu.vector_store %arg6[%c0_11, %c0_12], %14 {strides = array<i32>} : memref<8x16xf32, #tpu.memory_space<vmem>>, vector<8x16xf32>,
    return
  }
  func.func @transform_0(%arg0: i32) -> (i32, i32) {
    %c0_i32 = arith.constant 0 : i32
    %c0_i32_0 = arith.constant 0 : i32
    return %arg0, %c0_i32 : i32, i32
  }
  func.func @transform_1(%arg0: i32) -> (i32, i32) {
    %c0_i32 = arith.constant 0 : i32
    %c0_i32_0 = arith.constant 0 : i32
    %c0_i32_1 = arith.constant 0 : i32
    return %c0_i32, %c0_i32_0 : i32, i32
  }
  func.func @transform_2(%arg0: i32) -> (i32, i32) {
    %c0_i32 = arith.constant 0 : i32
    %c0_i32_0 = arith.constant 0 : i32
    %c0_i32_1 = arith.constant 0 : i32
    return %c0_i32, %c0_i32_0 : i32, i32
  }
  func.func @transform_3(%arg0: i32) -> (i32, i32) {
    %c0_i32 = arith.constant 0 : i32
    %c0_i32_0 = arith.constant 0 : i32
    %c0_i32_1 = arith.constant 0 : i32
    return %c0_i32, %c0_i32_0 : i32, i32
  }
  func.func @transform_4(%arg0: i32) -> (i32, i32) {
    %c0_i32 = arith.constant 0 : i32
    %c0_i32_0 = arith.constant 0 : i32
    %c0_i32_1 = arith.constant 0 : i32
    return %c0_i32, %c0_i32_0 : i32, i32
  }
  func.func @transform_5(%arg0: i32) -> (i32, i32) {
    %c0_i32 = arith.constant 0 : i32
    %c0_i32_0 = arith.constant 0 : i32
    return %arg0, %c0_i32 : i32, i32
  }
}

</mosaic_0001>

<bundles_post_ra>
// kernel: tpu_custom_call.1
= control target key start
LH: loop header
LB: loop body
LE: loop exit
PB: predicated region body
PF: predicated region fallthrough
CT: control target
= control target key end

     0   :  { %v390_v2 = vmov 0   ;;  %vm60_vm0 = vcmask 261120   ;;  %s494_s0 = inlined_call_operand.vmem [shape: f32[8,32], index: 0, kind: input, shape index: {}]   ;;  %s495_s1 = inlined_call_operand.vmem [shape: bf16[32,256], index: 1, kind: input, shape index: {}]   ;;  %s496_s2 = inlined_call_operand.vmem [shape: f32[1,256], index: 2, kind: input, shape index: {}]   ;;  %s497_s3 = inlined_call_operand.vmem [shape: bf16[256,16], index: 3, kind: input, shape index: {}]   ;;  %s498_s4 = inlined_call_operand.vmem [shape: f32[1,16], index: 4, kind: input, shape index: {}]   ;;  %s499_s5 = inlined_call_operand.hbm [shape: f32[8,16], index: 5, kind: output, shape index: {}]  }
   0x1   :  { %v346_v0 = vld [vmem:[%s495_s1 + $0x14] ss:$8 sps:$4 sm:$0xff]   ;;  %v348_v1 = vld [vmem:[%s495_s1 + $0x10] ss:$8 sps:$4 sm:$0xff]   ;;  %96 = vmatprep.mubr.bf16.mxu0 %v390_v2  ;;  %v349_v3 = vld [vmem:[%s495_s1 + $0x4] ss:$8 sps:$4 sm:$0xff]  }
   0x2   :  { %76 = vmatprep.subr.bf16.mxu0 %v346_v0  ;;  %v351_v4 = vld [vmem:[%s495_s1] ss:$8 sps:$4 sm:$0xff]   ;;  %v352_v6 = vld [vmem:[%s497_s3 + $0x78] sm:$0xff]   ;;  %v354_v8 = vld [vmem:[%s497_s3 + $0x70] sm:$0xff]  }
   0x3   :  { %v22_v5 = vld [vmem:[%s494_s0] sm:$0xff]  ;;  %77 = vmatpush1.bf16.msra.mxu0 %v348_v1  ;;  %v353_v7 = vld [vmem:[%s497_s3 + $0x38] sm:$0xff]   ;;  %322 = vmatprep.subr.bf16.mxu1 %v352_v6  ;;  %v355_v10 = vld [vmem:[%s497_s3 + $0x30] sm:$0xff]  }
   0x4   :  { %78 = vmatprep.subr.bf16.mxu0 %v349_v3  ;;  %v23_v9 = vpack.c.bf16 %v22_v5, %v22_v5  ;;  %323 = vmatpush3.bf16.msra.mxu1 %v353_v7  ;;  %v356_v11 = vld [vmem:[%s497_s3 + $0x68] sm:$0xff]   ;;  %v358_v13 = vld [vmem:[%s497_s3 + $0x60] sm:$0xff]   ;;  %v360_v15 = vld [vmem:[%s497_s3 + $0x58] sm:$0xff]  }
   0x5   :  { %324 = vmatprep.subr.bf16.mxu1 %v354_v8  ;;  %v357_v12 = vld [vmem:[%s497_s3 + $0x28] sm:$0xff]   ;;  %v359_v14 = vld [vmem:[%s497_s3 + $0x20] sm:$0xff]   ;;  %v361_v16 = vld [vmem:[%s497_s3 + $0x18] sm:$0xff]  }
   0x7   :  { %79 = vmatpush1.bf16.msra.mxu0 %v351_v4 }
   0x8   :  { %325 = vmatpush3.bf16.msra.mxu1 %v355_v10 }
   0x9   :  { %326 = vmatprep.subr.bf16.mxu1 %v356_v11 }
   0xa   :  { %304 = vmatmul.mubr.msk.bf16.vlgmr.msra.gmra.mxu0 %vm60_vm0, %v23_v9 }
   0xc   :  { %327 = vmatpush3.bf16.msra.mxu1 %v357_v12 }
   0xd   :  { %328 = vmatprep.subr.bf16.mxu1 %v358_v13 }
  0x10   :  { %329 = vmatpush3.bf16.msra.mxu1 %v359_v14 }
  0x11   :  { %10 = vsyncpa [#allocation3], 0  ;;  %330 = vmatprep.subr.bf16.mxu1 %v360_v15  ;;  %v362_v17 = vld [vmem:[%s497_s3 + $0x50] sm:$0xff]   ;;  %v364_v19 = vld [vmem:[%s497_s3 + $0x48] sm:$0xff]   ;;  %v30_v23 = vlaneseq  ;;  %vm284_vm1 = vcmask 130048  }
  0x12   :  { %v363_v18 = vld [vmem:[%s497_s3 + $0x10] sm:$0xff]   ;;  %v365_v20 = vld [vmem:[%s497_s3 + $0x8] sm:$0xff]   ;;  %v366_v21 = vld [vmem:[%s497_s3 + $0x40] sm:$0xff]  }
  0x13   :  { %v367_v22 = vld [vmem:[%s497_s3] sm:$0xff]   ;;  %v31_v24 = vshrl.u32 %v30_v23, 7 }
  0x14   :  { %331 = vmatpush3.bf16.msra.mxu1 %v361_v16  ;;  %v28_v26 = vld [vmem:[%s496_s2] sm:$0x3]  ;;  %s391_s2 = smov [#allocation2]  }
  0x15   :  { %332 = vmatprep.subr.bf16.mxu1 %v362_v17  ;;  %v32_v25 = vsub.s32 0, %v31_v24  ;;  %v36_v27 = vsub.s32 1, %v31_v24  ;;  %v305_v41 = vld [vmem:[%s498_s4] ss:$0 sm:$0xff]  ;;  %s292_s0 = sshll.u32 %s391_s2, 4  ;;  %s293_s0 = int_to_ptr.vmem [resolvable:$true] %s292_s0 }
  0x16   :  { %s368_s10 = scalar_lea.vmem %s293_s0, 128  ;;  %p373_p1 = scmp.lt.s32.totalorder %s293_s0, %s293_s0 }
  0x17   :  { %v33_v28 = vrot.slane %v28_v26, %v32_v25  ;;  %v37_v29 = vrot.slane %v28_v26, %v36_v27  ;;  %p369_p0 = scmp.ne.s32.totalorder %s293_s0, %s368_s10  ;;  %p374_p2 = scmp.lt.s32.totalorder %s368_s10, %s368_s10 }
  0x18   :  { %333 = vmatpush3.bf16.msra.mxu1 %v363_v18 }
  0x19   :  { %334 = vmatprep.subr.bf16.mxu1 %v364_v19  ;;  %p375_p3 = por %p374_p2, %p373_p1 }
  0x1b   :  { %p376_p4 = pnand %p375_p3, %p369_p0 }
  0x1c   :  { %335 = vmatpush3.bf16.msra.mxu1 %v365_v20 }
  0x1d   :  { %336 = vmatprep.subr.bf16.mxu1 %v366_v21 }
  0x20   :  { %337 = vmatpush3.bf16.msra.mxu1 %v367_v22 }
  0xca   :  { %v98_v30 = vpop.f32.mrf.mxu0 }
  0xcb   :  { %v99_v31 = vadd.f32 %v98_v30, %v33_v28 }
  0xcc   :  { %v100_v32 = vpop.f32.mrf.mxu0 }
  0xcd   :  { %v101_v33 = vadd.f32 %v100_v32, %v37_v29  ;;  %v105_v34 = vmax.f32 %v99_v31, 0.0 }
  0xce   :  { %v102_v35 = vpop.f32.mrf.mxu0 }
  0xcf   :  { %v106_v36 = vmax.f32 %v101_v33, 0.0  ;;  %v107_v39 = vpack.c.bf16 %v105_v34, %v105_v34 }
  0xd0   :  { %v103_v37 = vpop.f32.mrf.mxu0 }
  0xd1   :  { %v108_v38 = vpack.c.bf16 %v106_v36, %v106_v36 }
  0xd3   :  { %276 = vmatprep.mubr.bf16.mxu1 %v108_v38 }
  0xd4   :  { %277 = vmatmul.mubr.bf16.vlgmr.msra.gmra.mxu1 %v107_v39 }
 0x194   :  { %v338_v40 = vpop.f32.mrf.mxu1 }
 0x196   :  { %v339_v42 = vpop.f32.mrf.mxu1 }
 0x197   :  { %v340_v43 = vadd.f32 %v339_v42, %v338_v40 }
 0x198   :  { %v341_v44 = vpop.f32.mrf.mxu1 }
 0x199   :  { %v279_v45 = vadd.f32 %v340_v43, %v305_v41 }
 0x19a   :  { %v342_v46 = vpop.f32.mrf.mxu1 }
 0x19b   :  { %285 = vst.msk [vmem:[#allocation2] sm:$0xff] %vm284_vm1, %v279_v45 }
 0x19c   :  { %379 = shalt.err (!%p376_p4)
}
 0x19d   :  { %295 = dma.vmem_to_hbm [thread:$0]  %s293_s0, 128, %s499_s5, [#allocation3]  }
 0x19e   :  { %388 = dma.done.wait [#allocation3], 128  }
 0x19f   :  { %389 = vsyncadd [#allocation3], 4294967168 }
 0x1a0   :  { %299 = vsyncpa [#allocation3], 1 }

</bundles_post_ra>
